<compile_context>
chip_gen: v5e
topology: v5e:2x2
jax: 0.10.0
libtpu: 0.0.40
codegen_flags: <defaults>
</compile_context>

<pallas_src>
import jax
import jax.numpy as jnp
from jax.experimental import pallas as pl
from jax.experimental.pallas import tpu as pltpu

IN_F = 5
OUT_F = 10
PAD_F = OUT_F + 1          # width after F.pad(..., (0, 1))
MAX_GROUP = 8              # kept at 8 everywhere: safe on v5e's MXU (kron zero-FLOPs)


def fused_linear_kernel(x_ref, w_ref, b_ref, o_ref):
    # x_ref: (tb, G*5), w_ref: (G*5, G*11) block-diag of (2*W^T | 0),
    # b_ref: (1, G*11) tiled (2*b | 0), o_ref: (tb, G*11).
    # One matmul applies Linear(5,10), the zero pad column and the "x + pad(x)"
    # doubling (all folded into the constants) for G logical rows per lane-row.
    o_ref[...] = (jnp.dot(x_ref[...], w_ref[...],
                          preferred_element_type=jnp.float32)
                  + b_ref[...]).astype(o_ref.dtype)


def _tpu_config():
    """Generation-gated (vmem_limit_bytes, packed-row tile cap)."""
    vmem_limit = 32 * 1024 * 1024   # conservative fallback
    tb_cap = 8192
    try:
        info = pltpu.get_tpu_info()
        vmem_cap = getattr(info, "vmem_capacity_bytes", None)
        if vmem_cap is not None:
            if vmem_cap >= 100 * 1024 * 1024:
                # v5e / v6e class: 128 MiB physical VMEM.
                vmem_limit = 64 * 1024 * 1024
                tb_cap = 16384
            else:
                # v7x class: 64 MiB VMEM per TensorCore -> leave scratch headroom.
                vmem_limit = 40 * 1024 * 1024
                tb_cap = 8192
    except Exception:
        pass
    return vmem_limit, tb_cap


def _pick_group(M: int, max_group: int = MAX_GROUP) -> int:
    """Largest power-of-two GROUP (<= max_group) dividing M, so the lane-dense
    HBM view reshape is zero-copy and no wrapper-side pad/slice passes exist."""
    g = max_group
    while g > 1 and M % g:
        g //= 2
    return g


def _pick_tile(R: int, cap: int):
    """Packed-row tile + step count: balanced steps; even step count when >1 so
    v7x's two TensorCores split the 'parallel' grid axis evenly (harmless on
    single-TC v5e/v6e)."""
    if R <= 8:
        return R, 1                          # block == full dim (exempt from 8-multiple rule)
    n = pl.cdiv(R, cap)
    if n > 1 and n % 2:
        n += 1                               # even number of grid steps
    tb = ((pl.cdiv(R, n) + 7) // 8) * 8      # balanced, multiple of 8
    n = pl.cdiv(R, tb)
    return tb, n


def model_forward(x, weight, bias, out_dtype=jnp.float32):
    """x: (B, H, W, IN_F) f32; weight: (OUT_F, IN_F); bias: (OUT_F,) -> (B, H, W, PAD_F)."""
    B, H, W, C = x.shape
    assert C == IN_F
    M = B * H * W

    group = _pick_group(M)
    in_w = group * IN_F                       # packed input width (lanes)
    out_w = group * PAD_F                     # packed output width (lanes)
    R = M // group                            # packed rows

    # Lane-dense view: pack `group` logical rows per lane-row.
    # Contiguous row-major reshape -> zero-copy in HBM, no pad/slice passes.
    xv = x.reshape(R, in_w).astype(jnp.float32)

    # Fold the x2 and the zero pad into the constants:
    #   per-row map: out(1x11) = in(1x5) @ (2*W^T | 0) + (2*b | 0)
    # then block-diagonalize for `group` packed rows.
    w2p = jnp.concatenate(
        [2.0 * weight.T.astype(jnp.float32),
         jnp.zeros((IN_F, PAD_F - OUT_F), jnp.float32)], axis=1)          # (5, 11)
    w_big = jnp.kron(jnp.eye(group, dtype=jnp.float32), w2p)              # (G*5, G*11)
    b2p = jnp.concatenate(
        [2.0 * bias.astype(jnp.float32),
         jnp.zeros((PAD_F - OUT_F,), jnp.float32)])                       # (11,)
    b_big = jnp.tile(b2p, group)[None, :]                                 # (1, G*11)

    vmem_limit, tb_cap = _tpu_config()
    tb, n_steps = _pick_tile(R, tb_cap)
    grid = (n_steps,)

    itemsize = jnp.dtype(out_dtype).itemsize
    outv = pl.pallas_call(
        fused_linear_kernel,
        out_shape=jax.ShapeDtypeStruct((R, out_w), out_dtype),
        grid=grid,
        in_specs=[
            pl.BlockSpec((tb, in_w), lambda i: (i, 0)),
            pl.BlockSpec((in_w, out_w), lambda i: (0, 0)),
            pl.BlockSpec((1, out_w), lambda i: (0, 0)),
        ],
        out_specs=pl.BlockSpec((tb, out_w), lambda i: (i, 0)),
        compiler_params=pltpu.CompilerParams(
            dimension_semantics=("parallel",),
            vmem_limit_bytes=vmem_limit),
        cost_estimate=pl.CostEstimate(
            # block-diag matmul includes the structural zeros
            flops=2 * R * in_w * out_w,
            transcendentals=0,
            bytes_accessed=(R * in_w * 4 + R * out_w * itemsize
                            + in_w * out_w * 4 + out_w * 4)),
    )(xv, w_big, b_big)

    return outv.reshape(B, H, W, PAD_F)        # zero-copy reshape


def reference_forward(x, weight, bias):
    y = jnp.einsum("bhwc,oc->bhwo", x, weight) + bias            # linear
    y_pad = jnp.pad(y, ((0, 0), (0, 0), (0, 0), (0, 1)))         # F.pad(y, (0, 1))
    y_ext = jnp.pad(y, ((0, 0), (0, 0), (0, 0), (0, 1)))         # zero-extended LHS
    return y_ext + y_pad


if __name__ == "__main__":
    key = jax.random.PRNGKey(0)
    kx, kw, kb = jax.random.split(key, 3)

    # Small shapes consistent with the module: feature dim = 5 for Linear(5, 10).
    B, H, W = 2, 16, 16
    x = jax.random.normal(kx, (B, H, W, IN_F), dtype=jnp.float32)

    # Deterministic Linear(5, 10) parameters (torch-style uniform init bound).
    bound = 1.0 / (IN_F ** 0.5)
    weight = jax.random.uniform(kw, (OUT_F, IN_F), jnp.float32, -bound, bound)
    bias = jax.random.uniform(kb, (OUT_F,), jnp.float32, -bound, bound)

    out = model_forward(x, weight, bias)
    out = jax.block_until_ready(out)

    ref = reference_forward(x, weight, bias)
    assert out.shape == (B, H, W, PAD_F)
    assert jnp.allclose(out, ref, atol=1e-5, rtol=1e-5), "mismatch vs reference"

    # Exercise an M not divisible by 8 (GROUP falls back to a divisor, no pad/slice).
    x_odd = jax.random.normal(kx, (1, 3, 7, IN_F), dtype=jnp.float32)
    out_odd = jax.block_until_ready(model_forward(x_odd, weight, bias))
    ref_odd = reference_forward(x_odd, weight, bias)
    assert jnp.allclose(out_odd, ref_odd, atol=1e-5, rtol=1e-5), "mismatch (odd M)"

    print("KERNEL_OK")
</pallas_src>

<mosaic_0001>
module attributes {stable_mosaic.version = 11 : i64} {
  func.func @fused_linear_kernel(%arg0: i32, %arg1: memref<64x40xf32, #tpu.memory_space<vmem>>, %arg2: memref<40x88xf32, #tpu.memory_space<vmem>>, %arg3: memref<1x88xf32, #tpu.memory_space<vmem>>, %arg4: memref<64x88xf32, #tpu.memory_space<vmem>>) attributes {dimension_semantics = [#tpu.dimension_semantics<parallel>], iteration_bounds = array<i64: 1>, scalar_prefetch = 0 : i64, scratch_operands = 0 : i64, tpu.core_type = #tpu.core_type<tc>, window_params = [{transform_indices = @transform_0, window_bounds = array<i64: 64, 40>}, {pipeline_mode = #tpu.pipeline_mode<synchronous>, transform_indices = @transform_1, window_bounds = array<i64: 40, 88>}, {pipeline_mode = #tpu.pipeline_mode<synchronous>, transform_indices = @transform_2, window_bounds = array<i64: 1, 88>}, {transform_indices = @transform_3, window_bounds = array<i64: 64, 88>}]} {
    %c0 = arith.constant 0 : index
    %c0_0 = arith.constant 0 : index
    %0 = vector.load %arg1[%c0, %c0_0] : memref<64x40xf32, #tpu.memory_space<vmem>>, vector<64x40xf32>
    %c0_1 = arith.constant 0 : index
    %c0_2 = arith.constant 0 : index
    %1 = vector.load %arg2[%c0_1, %c0_2] : memref<40x88xf32, #tpu.memory_space<vmem>>, vector<40x88xf32>
    %cst = arith.constant dense<0.000000e+00> : vector<64x88xf32>
    %2 = tpu.matmul %0, %1, %cst {dimension_numbers = #tpu.dot_dimension_numbers<[1], [0], [0], [1], [0, 0, 1, 1], [], []>} : vector<64x40xf32>, vector<40x88xf32>, vector<64x88xf32> -> vector<64x88xf32>
    %c0_3 = arith.constant 0 : index
    %c0_4 = arith.constant 0 : index
    %3 = vector.load %arg3[%c0_3, %c0_4] : memref<1x88xf32, #tpu.memory_space<vmem>>, vector<1x88xf32>
    %4 = vector.broadcast %3 : vector<1x88xf32> to vector<64x88xf32>
    %5 = arith.addf %2, %4 : vector<64x88xf32>
    %c0_5 = arith.constant 0 : index
    %c0_6 = arith.constant 0 : index
    %6 = vector.load %arg4[%c0_5, %c0_6] : memref<64x88xf32, #tpu.memory_space<vmem>>, vector<64x88xf32>
    tpu.vector_store %arg4[%c0_5, %c0_6], %5 {strides = array<i32>} : memref<64x88xf32, #tpu.memory_space<vmem>>, vector<64x88xf32>,
    return
  }
  func.func @transform_0(%arg0: i32) -> (i32, i32) {
    %c0_i32 = arith.constant 0 : i32
    %c0_i32_0 = arith.constant 0 : i32
    return %arg0, %c0_i32 : i32, i32
  }
  func.func @transform_1(%arg0: i32) -> (i32, i32) {
    %c0_i32 = arith.constant 0 : i32
    %c0_i32_0 = arith.constant 0 : i32
    %c0_i32_1 = arith.constant 0 : i32
    return %c0_i32, %c0_i32_0 : i32, i32
  }
  func.func @transform_2(%arg0: i32) -> (i32, i32) {
    %c0_i32 = arith.constant 0 : i32
    %c0_i32_0 = arith.constant 0 : i32
    %c0_i32_1 = arith.constant 0 : i32
    return %c0_i32, %c0_i32_0 : i32, i32
  }
  func.func @transform_3(%arg0: i32) -> (i32, i32) {
    %c0_i32 = arith.constant 0 : i32
    %c0_i32_0 = arith.constant 0 : i32
    return %arg0, %c0_i32 : i32, i32
  }
}

</mosaic_0001>

<bundles_post_ra>
// kernel: tpu_custom_call.1
= control target key start
LH: loop header
LB: loop body
LE: loop exit
PB: predicated region body
PF: predicated region fallthrough
CT: control target
= control target key end

     0   :  { %s262_s0 = inlined_call_operand.vmem [shape: f32[64,40], index: 0, kind: input, shape index: {}]   ;;  %s263_s1 = inlined_call_operand.vmem [shape: f32[40,88], index: 1, kind: input, shape index: {}]   ;;  %s264_s2 = inlined_call_operand.vmem [shape: f32[1,88], index: 2, kind: input, shape index: {}]   ;;  %s265_s3 = inlined_call_operand.hbm [shape: f32[64,88], index: 3, kind: output, shape index: {}]  }
   0x1   :  { %v27_v0 = vld [vmem:[%s263_s1 + $0x20] sm:$0xff]  ;;  %v26_v1 = vld [vmem:[%s263_s1 + $0x18] sm:$0xff]  ;;  %v25_v2 = vld [vmem:[%s263_s1 + $0x10] sm:$0xff] }
   0x2   :  { %134 = vmatpush.msra.mxu2 %v27_v0  ;;  %135 = vmatpush.msra.mxu3 %v27_v0  ;;  %v24_v3 = vld [vmem:[%s263_s1 + $0x8] sm:$0xff] }
   0x3   :  { %68 = vmatpush.msra.mxu0 %v27_v0  ;;  %133 = vmatpush.msra.mxu1 %v27_v0 }
   0x4   :  { %137 = vmatpush.msra.mxu2 %v26_v1  ;;  %138 = vmatpush.msra.mxu3 %v26_v1 }
   0x5   :  { %69 = vmatpush.msra.mxu0 %v26_v1  ;;  %136 = vmatpush.msra.mxu1 %v26_v1 }
   0x6   :  { %140 = vmatpush.msra.mxu2 %v25_v2  ;;  %141 = vmatpush.msra.mxu3 %v25_v2 }
   0x7   :  { %8 = vsyncpa [#allocation3], 0  ;;  %v23_v4 = vld [vmem:[%s263_s1] sm:$0xff]  ;;  %70 = vmatpush.msra.mxu0 %v25_v2  ;;  %139 = vmatpush.msra.mxu1 %v25_v2  ;;  %vm32_vm0 = vcmask 326656   ;;  %v21_v6 = vld [vmem:[%s262_s0 + $0x30] sm:$0xff]  ;;  %vm98_vm1 = vcmask 719872  }
   0x8   :  { %143 = vmatpush.msra.mxu2 %v24_v3  ;;  %144 = vmatpush.msra.mxu3 %v24_v3  ;;  %v19_v5 = vld [vmem:[%s262_s0 + $0x20] sm:$0xff]  ;;  %v17_v8 = vld [vmem:[%s262_s0 + $0x10] sm:$0xff]  ;;  %v20_v9 = vld [vmem:[%s262_s0 + $0x28] sm:$0xff]  ;;  %s113_s14 = sshll.u32 %s265_s3, 4  ;;  %s179_s15 = smov 128   ;;  %s114_s14 = int_to_ptr.hbm [resolvable:$true] %s113_s14 }
   0x9   :  { %71 = vmatpush.msra.mxu0 %v24_v3  ;;  %142 = vmatpush.msra.mxu1 %v24_v3  ;;  %v15_v7 = vld [vmem:[%s262_s0] sm:$0xff]  ;;  %v22_v10 = vld [vmem:[%s262_s0 + $0x38] sm:$0xff]  ;;  %v16_v11 = vld [vmem:[%s262_s0 + $0x8] sm:$0xff]  ;;  %s180_s16 = smov 8  }
   0xa   :  { %146 = vmatpush.msra.mxu2 %v23_v4  ;;  %147 = vmatpush.msra.mxu3 %v23_v4  ;;  %v18_v12 = vld [vmem:[%s262_s0 + $0x18] sm:$0xff]  ;;  %v151_v13 = vld [vmem:[%s264_s2] ss:$0 sm:$0xff]  ;;  %s178_s0 = smov [#allocation2]  }
   0xb   :  { %129 = vmatmul.msk.f32.vlgmr.msra.gmra.mxu2 %vm32_vm0, %v19_v5  ;;  %131 = vmatmul.msk.f32.vlgmr.msra.gmra.mxu3 %vm32_vm0, %v21_v6  ;;  %s111_s2 = sshll.u32 %s178_s0, 4  ;;  %s112_s2 = int_to_ptr.vmem [resolvable:$true] %s111_s2 }
   0xc   :  { %72 = vmatpush.msra.mxu0 %v23_v4  ;;  %145 = vmatpush.msra.mxu1 %v23_v4 }
   0xd   :  { %125 = vmatmul.msk.f32.vlgmr.msra.gmra.mxu0 %vm32_vm0, %v15_v7  ;;  %127 = vmatmul.msk.f32.vlgmr.msra.gmra.mxu1 %vm32_vm0, %v17_v8 }
  0x13   :  { %130 = vmatmul.msk.f32.gmra.mxu2 %vm32_vm0, %v20_v9  ;;  %132 = vmatmul.msk.f32.gmra.mxu3 %vm32_vm0, %v22_v10 }
  0x15   :  { %126 = vmatmul.msk.f32.gmra.mxu0 %vm32_vm0, %v16_v11  ;;  %128 = vmatmul.msk.f32.gmra.mxu1 %vm32_vm0, %v18_v12 }
  0x8a   :  { %v74_v14 = vpop.f32.mrf.mxu0  ;;  %v80_v15 = vpop.f32.mrf.mxu1 }
  0x8b   :  { %v75_v16 = vadd.f32 %v151_v13, %v74_v14  ;;  %v81_v17 = vadd.f32 %v151_v13, %v80_v15 }
  0x8d   :  { %99 = vst.msk [vmem:[#allocation2] sm:$0xff] %vm98_vm1, %v75_v16 }
  0x8e   :  { %101 = vst.msk [vmem:[#allocation2 + $0x10] sm:$0xff] %vm98_vm1, %v81_v17  ;;  %v86_v18 = vpop.f32.mrf.mxu2  ;;  %v92_v19 = vpop.f32.mrf.mxu3 }
  0x8f   :  { %v87_v20 = vadd.f32 %v151_v13, %v86_v18  ;;  %v93_v21 = vadd.f32 %v151_v13, %v92_v19 }
  0x91   :  { %103 = vst.msk [vmem:[#allocation2 + $0x20] sm:$0xff] %vm98_vm1, %v87_v20 }
  0x92   :  { %105 = vst.msk [vmem:[#allocation2 + $0x30] sm:$0xff] %vm98_vm1, %v93_v21  ;;  %v77_v22 = vpop.f32.mrf.mxu0  ;;  %v83_v23 = vpop.f32.mrf.mxu1 }
  0x93   :  { %v78_v24 = vadd.f32 %v151_v13, %v77_v22  ;;  %v84_v25 = vadd.f32 %v151_v13, %v83_v23 }
  0x95   :  { %100 = vst.msk [vmem:[#allocation2 + $0x8] sm:$0xff] %vm98_vm1, %v78_v24 }
  0x96   :  { %102 = vst.msk [vmem:[#allocation2 + $0x18] sm:$0xff] %vm98_vm1, %v84_v25  ;;  %v89_v26 = vpop.f32.mrf.mxu2  ;;  %v95_v27 = vpop.f32.mrf.mxu3 }
  0x97   :  { %v90_v28 = vadd.f32 %v151_v13, %v89_v26  ;;  %v96_v29 = vadd.f32 %v151_v13, %v95_v27 }
  0x99   :  { %104 = vst.msk [vmem:[#allocation2 + $0x28] sm:$0xff] %vm98_vm1, %v90_v28 }
  0x9a   :  { %106 = vst.msk [vmem:[#allocation2 + $0x38] sm:$0xff] %vm98_vm1, %v96_v29 }
  0x9b   :  { %119 = dma.vmem_to_hbm [thread:$0]  %s112_s2, 1024, %s114_s14, [#allocation3], %s179_s15, %s179_s15, %s180_s16  }
  0x9c   :  { %176 = dma.done.wait [#allocation3], 1024  }
  0x9d   :  { %177 = vsyncadd [#allocation3], 4294966272 }
  0x9e   :  { %124 = vsyncpa [#allocation3], 1 }

</bundles_post_ra>
